<compile_context>
chip_gen: v7x
topology: tpu7x:2x2x1
jax: 0.10.0
libtpu: 0.0.40
codegen_flags: <defaults>
</compile_context>

<pallas_src>
import functools

import jax
import jax.numpy as jnp
from jax.experimental import pallas as pl
from jax.experimental.pallas import tpu as pltpu


_MAX_LANE_TILE = 2048   # max lane-tile (elements) along the spatial axis


def _hw_vmem_limit():
    """Scoped VMEM limit (bytes), picked per TPU generation."""
    try:
        phys = int(pltpu.get_tpu_info().vmem_capacity_bytes)
    except Exception:
        return 40 * 1024 * 1024           # safe everywhere
    if phys <= 64 * 1024 * 1024:
        return 48 * 1024 * 1024           # v7x-class: 64 MiB VMEM per TC
    return 64 * 1024 * 1024               # v5e / v6e: 128 MiB physical


def _sublane_quantum(itemsize):
    # f32 -> 8, bf16 -> 16, int8/fp8 -> 32 (native packed sublane tiling).
    return max(8, 32 // int(itemsize))


def _pick_tile(dim, quantum, max_tile):
    """Largest block size that divides `dim`, is a multiple of `quantum`, and
    is <= max_tile.  Falls back to the full dim (always a legal block)."""
    if dim <= max_tile:
        return dim
    best = None
    d = quantum
    while d <= max_tile:
        if dim % d == 0:
            best = d
        d += quantum
    # TODO(synk): masked tail tiles (pl.cdiv grid + bounds masks) would avoid
    # this full-dim fallback for prime-ish dims; not needed for typical maps.
    return best if best is not None else dim


# ----------------------------------------------------------------------------
# Fused single-pass kernel: whole activation resident in VMEM.
# x: (N, C, L), gamma/beta: (C, 1).  Centered (two in-VMEM sweeps) variance.
# ----------------------------------------------------------------------------
def _fused_kernel(x_ref, gamma_ref, beta_ref, o_ref, *, count, eps):
    x = x_ref[...].astype(jnp.float32)                                   # (N, C, L)
    mean = jnp.sum(jnp.sum(x, axis=2, keepdims=True),
                   axis=0, keepdims=True) / count                        # (1, C, 1)
    xc = x - mean
    var = jnp.sum(jnp.sum(xc * xc, axis=2, keepdims=True),
                  axis=0, keepdims=True) / count                         # (1, C, 1)
    rstd = jax.lax.rsqrt(var + eps)
    scale = gamma_ref[...][None] * rstd                                  # (1, C, 1)
    shift = beta_ref[...][None]                                          # (1, C, 1)
    o_ref[...] = (xc * scale + shift).astype(o_ref.dtype)


# ----------------------------------------------------------------------------
# Two-pass streaming path, pass 1: per-row (= per (n, c) pair) sum and
# sum-of-squares over the spatial/lane axis.  Outputs stay resident across the
# lane-reduction grid axis.
# ----------------------------------------------------------------------------
def _stats_kernel(x_ref, sum_ref, sq_ref, *, use_mxu):
    @pl.when(pl.program_id(1) == 0)
    def _():
        sum_ref[...] = jnp.zeros_like(sum_ref)
        sq_ref[...] = jnp.zeros_like(sq_ref)

    x = x_ref[...].astype(jnp.float32)
    if use_mxu:
        # Lane reduction as an MXU matvec so the VPU tree-add / XLU cross-lane
        # reduce never become the binding slot (relevant on v7x; hidden under
        # HBM time on v5e/v6e either way).
        ones = jnp.ones((x.shape[1], 1), jnp.float32)
        sum_ref[...] += jnp.dot(x, ones, preferred_element_type=jnp.float32)
        sq_ref[...] += jnp.dot(x * x, ones, preferred_element_type=jnp.float32)
    else:
        sum_ref[...] += jnp.sum(x, axis=1, keepdims=True)        # (tm, 1)
        sq_ref[...] += jnp.sum(x * x, axis=1, keepdims=True)     # (tm, 1)


# ----------------------------------------------------------------------------
# Two-pass streaming path, pass 2: y = x * scale_row + shift_row (BN folded
# into a single per-row affine).  Lane-dense loads/stores over the spatial axis.
# ----------------------------------------------------------------------------
def _normalize_kernel(x_ref, scale_ref, shift_ref, o_ref):
    x = x_ref[...].astype(jnp.float32)
    o_ref[...] = (x * scale_ref[...] + shift_ref[...]).astype(o_ref.dtype)


@functools.partial(jax.jit, static_argnames=("eps", "force_two_pass"))
def batch_norm_domain_forward(x_nchw, gamma_all, beta_all, domain, *,
                              eps=1e-5, force_two_pass=False):
    """Forward of BatchNormDomain with norm_layer = nn.BatchNorm2d (training mode).

    x_nchw:    (N, C, H, W)
    gamma_all: (num_domains, C)  per-domain BN weight
    beta_all:  (num_domains, C)  per-domain BN bias
    domain:    the active domain id (self.domain)
    """
    N, C, H, W = x_nchw.shape
    L = H * W            # spatial size -> lane axis
    R = N * C            # (n, c) rows  -> sublane / row grid axis
    itemsize = int(jnp.dtype(x_nchw.dtype).itemsize)
    vmem_limit = _hw_vmem_limit()

    gamma = gamma_all[domain].astype(jnp.float32)    # (C,)
    beta = beta_all[domain].astype(jnp.float32)      # (C,)
    count = float(N) * float(L)

    # ---------------- Fused single-pass fast path ----------------
    # Working-set estimate per element: x + out (native dtype) + ~5 f32 temps.
    fused_per_elem = 2 * itemsize + 5 * 4
    use_fused = (not force_two_pass) and (R * L * fused_per_elem <= vmem_limit // 2)

    if use_fused:
        x3 = x_nchw.reshape(N, C, L)
        out3 = pl.pallas_call(
            functools.partial(_fused_kernel, count=count, eps=float(eps)),
            out_shape=jax.ShapeDtypeStruct((N, C, L), x_nchw.dtype),
            grid_spec=pltpu.PrefetchScalarGridSpec(
                num_scalar_prefetch=0,
                grid=(1,),
                in_specs=[
                    pl.BlockSpec((N, C, L), lambda i: (0, 0, 0)),
                    pl.BlockSpec((C, 1), lambda i: (0, 0)),
                    pl.BlockSpec((C, 1), lambda i: (0, 0)),
                ],
                out_specs=pl.BlockSpec((N, C, L), lambda i: (0, 0, 0)),
            ),
            compiler_params=pltpu.CompilerParams(
                dimension_semantics=("arbitrary",),
                vmem_limit_bytes=vmem_limit),
        )(x3, gamma.reshape(C, 1), beta.reshape(C, 1))
        return out3.reshape(N, C, H, W)

    # ---------------- Two-pass streaming path ----------------
    x_rows = x_nchw.reshape(R, L)          # free reshape, NCHW-native

    # Dtype-aware tile sizing: budget ~80% of the scoped VMEM limit for the
    # dominant (normalize) pass working set:
    #   2x double-buffered x + 2x double-buffered out (native dtype)
    #   + ~3 f32-sized compute temporaries.
    per_elem = 4 * itemsize + 3 * 4
    tile_elems_cap = (8 * vmem_limit // 10) // per_elem
    sub_q = _sublane_quantum(itemsize)

    tl = _pick_tile(L, 128, _MAX_LANE_TILE)
    tm = _pick_tile(R, sub_q, max(sub_q, tile_elems_cap // tl))
    if tm * tl > tile_elems_cap:
        # A full-dim fallback made the block too big; shrink the lane tile.
        tl = _pick_tile(L, 128, max(128, tile_elems_cap // max(tm, 1)))
    grid = (R // tm, L // tl)
    use_mxu = (tl % 128 == 0)

    # ---- Pass 1: per-row sum / sum-of-squares (full streaming pass over x). ----
    # TODO(synk): on v7x, verify with xprof that the row axis shards across both
    # TensorCores; if one TC is idle, switch to pltpu.CORE_PARALLEL / pl.core_map.
    row_sum, row_sq = pl.pallas_call(
        functools.partial(_stats_kernel, use_mxu=use_mxu),
        out_shape=(jax.ShapeDtypeStruct((R, 1), jnp.float32),
                   jax.ShapeDtypeStruct((R, 1), jnp.float32)),
        grid_spec=pltpu.PrefetchScalarGridSpec(
            num_scalar_prefetch=0,
            grid=grid,
            in_specs=[pl.BlockSpec((tm, tl), lambda i, j: (i, j))],
            out_specs=[pl.BlockSpec((tm, 1), lambda i, j: (i, 0)),
                       pl.BlockSpec((tm, 1), lambda i, j: (i, 0))],
        ),
        compiler_params=pltpu.CompilerParams(
            dimension_semantics=("parallel", "arbitrary"),
            vmem_limit_bytes=vmem_limit),
    )(x_rows)

    # ---- Tiny glue (O(N*C) elements, fused by XLA under the jit). ----
    ch_sum = row_sum.reshape(N, C).sum(axis=0)              # (C,)
    ch_sq = row_sq.reshape(N, C).sum(axis=0)                # (C,)
    mean = ch_sum / count
    # Biased variance via E[x^2]-E[x]^2; clamp guards against fp32 cancellation.
    # TODO(synk): centered second pass / Welford if strict parity is needed at
    # very large N*H*W (the fused fast path above already uses centered variance).
    var = jnp.maximum(ch_sq / count - mean * mean, 0.0)
    rstd = jax.lax.rsqrt(var + eps)
    scale_c = gamma * rstd                                  # (C,)
    shift_c = beta - mean * scale_c                         # (C,)
    scale_rows = jnp.broadcast_to(scale_c[None, :], (N, C)).reshape(R, 1)
    shift_rows = jnp.broadcast_to(shift_c[None, :], (N, C)).reshape(R, 1)

    # ---- Pass 2: lane-dense elementwise normalize + affine. ----
    out_rows = pl.pallas_call(
        _normalize_kernel,
        out_shape=jax.ShapeDtypeStruct((R, L), x_nchw.dtype),
        grid_spec=pltpu.PrefetchScalarGridSpec(
            num_scalar_prefetch=0,
            grid=grid,
            in_specs=[
                pl.BlockSpec((tm, tl), lambda i, j: (i, j)),   # x tile
                pl.BlockSpec((tm, 1), lambda i, j: (i, 0)),    # per-row scale
                pl.BlockSpec((tm, 1), lambda i, j: (i, 0)),    # per-row shift
            ],
            out_specs=pl.BlockSpec((tm, tl), lambda i, j: (i, j)),
        ),
        compiler_params=pltpu.CompilerParams(
            dimension_semantics=("parallel", "parallel"),
            vmem_limit_bytes=vmem_limit),
    )(x_rows, scale_rows, shift_rows)

    return out_rows.reshape(N, C, H, W)


if __name__ == "__main__":
    # Deterministic small example consistent with a BatchNorm2d input.
    N, C, H, W = 2, 4, 16, 16
    num_domains = 3
    domain = 1  # equivalent to module.set_domain(1)

    key = jax.random.PRNGKey(0)
    kx, kg, kb, kx2, kg2, kb2 = jax.random.split(key, 6)
    x = jax.random.normal(kx, (N, C, H, W), dtype=jnp.float32) * 2.0 + 0.5
    gamma_all = 1.0 + 0.1 * jax.random.normal(kg, (num_domains, C), dtype=jnp.float32)
    beta_all = 0.1 * jax.random.normal(kb, (num_domains, C), dtype=jnp.float32)

    def ref_bn(xv, g_all, b_all, dom, eps=1e-5):
        mean = jnp.mean(xv, axis=(0, 2, 3), keepdims=True)
        var = jnp.mean((xv - mean) ** 2, axis=(0, 2, 3), keepdims=True)
        g = g_all[dom].reshape(1, -1, 1, 1)
        b = b_all[dom].reshape(1, -1, 1, 1)
        return (xv - mean) / jnp.sqrt(var + eps) * g + b

    # Fused single-pass path (small activation fits in VMEM).
    out_fused = jax.block_until_ready(
        batch_norm_domain_forward(x, gamma_all, beta_all, domain))
    assert jnp.allclose(out_fused, ref_bn(x, gamma_all, beta_all, domain),
                        atol=1e-4, rtol=1e-4), "fused path mismatch vs reference"

    # Two-pass streaming path, exercised explicitly at a slightly larger shape.
    N2, C2, H2, W2 = 2, 8, 32, 32
    x2 = jax.random.normal(kx2, (N2, C2, H2, W2), dtype=jnp.float32) * 1.5 - 0.25
    gamma2 = 1.0 + 0.1 * jax.random.normal(kg2, (num_domains, C2), dtype=jnp.float32)
    beta2 = 0.1 * jax.random.normal(kb2, (num_domains, C2), dtype=jnp.float32)
    out_two = jax.block_until_ready(
        batch_norm_domain_forward(x2, gamma2, beta2, 2, force_two_pass=True))
    assert jnp.allclose(out_two, ref_bn(x2, gamma2, beta2, 2),
                        atol=1e-4, rtol=1e-4), "two-pass path mismatch vs reference"

    print("KERNEL_OK")
</pallas_src>

<mosaic_0001>
module attributes {stable_mosaic.version = 11 : i64} {
  func.func @_fused_kernel(%arg0: i32, %arg1: memref<2x4x256xf32, #tpu.memory_space<vmem>>, %arg2: memref<4x1xf32, #tpu.memory_space<vmem>>, %arg3: memref<4x1xf32, #tpu.memory_space<vmem>>, %arg4: memref<2x4x256xf32, #tpu.memory_space<vmem>>) attributes {dimension_semantics = [#tpu.dimension_semantics<arbitrary>], iteration_bounds = array<i64: 1>, scalar_prefetch = 0 : i64, scratch_operands = 0 : i64, tpu.core_type = #tpu.core_type<tc>, window_params = [{pipeline_mode = #tpu.pipeline_mode<synchronous>, transform_indices = @transform_0, window_bounds = array<i64: 2, 4, 256>}, {pipeline_mode = #tpu.pipeline_mode<synchronous>, transform_indices = @transform_1, window_bounds = array<i64: 4, 1>}, {pipeline_mode = #tpu.pipeline_mode<synchronous>, transform_indices = @transform_2, window_bounds = array<i64: 4, 1>}, {pipeline_mode = #tpu.pipeline_mode<synchronous>, transform_indices = @transform_3, window_bounds = array<i64: 2, 4, 256>}]} {
    %c0 = arith.constant 0 : index
    %c0_0 = arith.constant 0 : index
    %c0_1 = arith.constant 0 : index
    %0 = vector.load %arg1[%c0, %c0_0, %c0_1] : memref<2x4x256xf32, #tpu.memory_space<vmem>>, vector<2x4x256xf32>
    %cst = arith.constant dense<0.000000e+00> : vector<2x4xf32>
    %1 = vector.multi_reduction <add>, %0, %cst [2] : vector<2x4x256xf32> to vector<2x4xf32>
    %2 = vector.shape_cast %1 : vector<2x4xf32> to vector<2x4x1xf32>
    %cst_2 = arith.constant dense<0.000000e+00> : vector<4x1xf32>
    %3 = vector.multi_reduction <add>, %2, %cst_2 [0] : vector<2x4x1xf32> to vector<4x1xf32>
    %4 = vector.shape_cast %3 : vector<4x1xf32> to vector<1x4x1xf32>
    %cst_3 = arith.constant 5.120000e+02 : f32
    %5 = vector.broadcast %cst_3 : f32 to vector<1x4x1xf32>
    %6 = arith.divf %4, %5 : vector<1x4x1xf32>
    %7 = vector.broadcast %6 : vector<1x4x1xf32> to vector<2x4x256xf32>
    %8 = arith.subf %0, %7 : vector<2x4x256xf32>
    %9 = arith.mulf %8, %8 : vector<2x4x256xf32>
    %cst_4 = arith.constant dense<0.000000e+00> : vector<2x4xf32>
    %10 = vector.multi_reduction <add>, %9, %cst_4 [2] : vector<2x4x256xf32> to vector<2x4xf32>
    %11 = vector.shape_cast %10 : vector<2x4xf32> to vector<2x4x1xf32>
    %cst_5 = arith.constant dense<0.000000e+00> : vector<4x1xf32>
    %12 = vector.multi_reduction <add>, %11, %cst_5 [0] : vector<2x4x1xf32> to vector<4x1xf32>
    %13 = vector.shape_cast %12 : vector<4x1xf32> to vector<1x4x1xf32>
    %cst_6 = arith.constant 5.120000e+02 : f32
    %14 = vector.broadcast %cst_6 : f32 to vector<1x4x1xf32>
    %15 = arith.divf %13, %14 : vector<1x4x1xf32>
    %cst_7 = arith.constant 9.99999974E-6 : f32
    %16 = vector.broadcast %cst_7 : f32 to vector<1x4x1xf32>
    %17 = arith.addf %15, %16 : vector<1x4x1xf32>
    %18 = math.rsqrt %17 : vector<1x4x1xf32>
    %c0_8 = arith.constant 0 : index
    %c0_9 = arith.constant 0 : index
    %19 = vector.load %arg2[%c0_8, %c0_9] : memref<4x1xf32, #tpu.memory_space<vmem>>, vector<4x1xf32>
    %20 = vector.shape_cast %19 : vector<4x1xf32> to vector<1x4x1xf32>
    %21 = arith.mulf %20, %18 : vector<1x4x1xf32>
    %c0_10 = arith.constant 0 : index
    %c0_11 = arith.constant 0 : index
    %22 = vector.load %arg3[%c0_10, %c0_11] : memref<4x1xf32, #tpu.memory_space<vmem>>, vector<4x1xf32>
    %23 = vector.shape_cast %22 : vector<4x1xf32> to vector<1x4x1xf32>
    %24 = vector.broadcast %21 : vector<1x4x1xf32> to vector<2x4x256xf32>
    %25 = arith.mulf %8, %24 : vector<2x4x256xf32>
    %26 = vector.broadcast %23 : vector<1x4x1xf32> to vector<2x4x256xf32>
    %27 = arith.addf %25, %26 : vector<2x4x256xf32>
    %c0_12 = arith.constant 0 : index
    %c0_13 = arith.constant 0 : index
    %c0_14 = arith.constant 0 : index
    %28 = vector.load %arg4[%c0_12, %c0_13, %c0_14] : memref<2x4x256xf32, #tpu.memory_space<vmem>>, vector<2x4x256xf32>
    tpu.vector_store %arg4[%c0_12, %c0_13, %c0_14], %27 {strides = array<i32>} : memref<2x4x256xf32, #tpu.memory_space<vmem>>, vector<2x4x256xf32>,
    return
  }
  func.func @transform_0(%arg0: i32) -> (i32, i32, i32) {
    %c0_i32 = arith.constant 0 : i32
    %c0_i32_0 = arith.constant 0 : i32
    %c0_i32_1 = arith.constant 0 : i32
    %c0_i32_2 = arith.constant 0 : i32
    return %c0_i32, %c0_i32_0, %c0_i32_1 : i32, i32, i32
  }
  func.func @transform_1(%arg0: i32) -> (i32, i32) {
    %c0_i32 = arith.constant 0 : i32
    %c0_i32_0 = arith.constant 0 : i32
    %c0_i32_1 = arith.constant 0 : i32
    return %c0_i32, %c0_i32_0 : i32, i32
  }
  func.func @transform_2(%arg0: i32) -> (i32, i32) {
    %c0_i32 = arith.constant 0 : i32
    %c0_i32_0 = arith.constant 0 : i32
    %c0_i32_1 = arith.constant 0 : i32
    return %c0_i32, %c0_i32_0 : i32, i32
  }
  func.func @transform_3(%arg0: i32) -> (i32, i32, i32) {
    %c0_i32 = arith.constant 0 : i32
    %c0_i32_0 = arith.constant 0 : i32
    %c0_i32_1 = arith.constant 0 : i32
    %c0_i32_2 = arith.constant 0 : i32
    return %c0_i32, %c0_i32_0, %c0_i32_1 : i32, i32, i32
  }
}

</mosaic_0001>

<bundles_post_ra>
// kernel: batch_norm_domain_forward.1
= control target key start
LH: loop header
LB: loop body
LE: loop exit
PB: predicated region body
PF: predicated region fallthrough
CT: control target
= control target key end

     0   :  { %vm22_vm0 = vcmask 1043456   ;;  %v118_v10 = vmov 839922192   ;;  %v42_v12 = vlaneseq  ;;  %v119_v35 = vmov 0   ;;  %s170_s0 = inlined_call_operand.vmem [shape: f32[2,4,256], index: 0, kind: input, shape index: {}]   ;;  %s171_s2 = inlined_call_operand.vmem [shape: f32[4,1], index: 2, kind: input, shape index: {}]   ;;  %s172_s1 = inlined_call_operand.vmem [shape: f32[4,1], index: 1, kind: input, shape index: {}]   ;;  %s173_s3 = inlined_call_operand.vmem [shape: f32[2,4,256], index: 3, kind: output, shape index: {}]  }
   0x1   :  { %v14_v0 = vld [vmem:[%s170_s0] sm:$0xff]  ;;  %v15_v1 = vld [vmem:[%s170_s0 + $0x8] sm:$0xff]  ;;  %v40_v11 = vunpack.c.l.s4 %v118_v10  ;;  %112 = vset.pattern.permute.xlu0 %v119_v35  ;;  %113 = vset.pattern.permute.xlu1 %v119_v35 }
   0x2   :  { %v18_v2 = vcombine.high %v14_v0, %v14_v0  ;;  %v23_v3 = vsel %vm22_vm0, %v14_v0, 0.0  ;;  %v19_v4 = vcombine.high %v15_v1, %v15_v1  ;;  %v28_v6 = vsel %vm22_vm0, %v15_v1, 0.0  ;;  %v75_v36 = vld [vmem:[%s171_s2] sm:$0xf] }
   0x3   :  { %v41_v14 = vunpack.c.0.s8 %v40_v11  ;;  %v43_v15 = vshrl.u32 %v42_v12, 7  ;;  %v73_v44 = vld [vmem:[%s172_s1] sm:$0xf] }
   0x4   :  { %v24_v5 = vsel %vm22_vm0, %v18_v2, 0.0  ;;  %v29_v7 = vsel %vm22_vm0, %v19_v4, 0.0 }
   0x5   :  { %v25_v8 = vadd.f32 %v24_v5, %v23_v3  ;;  %v30_v9 = vadd.f32 %v29_v7, %v28_v6  ;;  %v44_v19 = vsub.s32 %v41_v14, %v43_v15 }
   0x7   :  { %26 = vadd.xlane.f32.xlu0 %v25_v8 }
   0xb   :  { %31 = vadd.xlane.f32.xlu0 %v30_v9 }
  0x94   :  { %v27_v13 = vpop.xlane.xlu0 %26 }
  0x95   :  { %v33_v17 = vsel %vm22_vm0, %v27_v13, 0.0 }
  0x98   :  { %v32_v16 = vpop.xlane.xlu0 %31 }
  0x99   :  { %v34_v18 = vsel %vm22_vm0, %v32_v16, 0.0 }
  0x9a   :  { %v35_v20 = vadd.f32 %v34_v18, %v33_v17 }
  0x9c   :  { %v37_v21 = vmul.f32 0.001953125, %v35_v20 }
  0x9e   :  { %v45_v22 = vrot.slane %v37_v21, %v44_v19 }
  0xa0   :  { %v48_v23 = vsub.f32 %v15_v1, %v45_v22  ;;  %v47_v24 = vsub.f32 %v14_v0, %v45_v22 }
  0xa2   :  { %v49_v25 = vmul.f32 %v47_v24, %v47_v24  ;;  %v50_v26 = vmul.f32 %v48_v23, %v48_v23 }
  0xa4   :  { %v53_v27 = vcombine.high %v49_v25, %v49_v25  ;;  %v54_v28 = vcombine.high %v50_v26, %v50_v26  ;;  %v57_v29 = vsel %vm22_vm0, %v49_v25, 0.0  ;;  %v62_v33 = vsel %vm22_vm0, %v50_v26, 0.0 }
  0xa6   :  { %v58_v30 = vsel %vm22_vm0, %v53_v27, 0.0  ;;  %v63_v32 = vsel %vm22_vm0, %v54_v28, 0.0 }
  0xa7   :  { %v59_v31 = vadd.f32 %v58_v30, %v57_v29  ;;  %v64_v34 = vadd.f32 %v63_v32, %v62_v33 }
  0xa9   :  { %60 = vadd.xlane.f32.xlu1 %v59_v31 }
  0xad   :  { %65 = vadd.xlane.f32.xlu1 %v64_v34 }
  0xbe   :  { %92 = vperm.xlu1 %113, %v75_v36  }
 0x136   :  { %v61_v37 = vpop.xlane.xlu1 %60 }
 0x137   :  { %v67_v39 = vsel %vm22_vm0, %v61_v37, 0.0 }
 0x13a   :  { %v66_v38 = vpop.xlane.xlu1 %65 }
 0x13b   :  { %v68_v40 = vsel %vm22_vm0, %v66_v38, 0.0 }
 0x13c   :  { %v69_v41 = vadd.f32 %v68_v40, %v67_v39 }
 0x13e   :  { %v70_v42 = vmul.f32 0.001953125, %v69_v41  ;;  %v93_v47 = vpop.permute.xlu1 %92 }
 0x13f   :  { %v100_v50 = vrot.slane %v93_v47, %v44_v19 }
 0x140   :  { %v71_v43 = vadd.f32 1e-05, %v70_v42 }
 0x142   :  { %116 = vrsqrt.f32 %v71_v43 }
 0x14c   :  { %v117_v45 = vpop.eup %116 }
 0x14d   :  { %v74_v46 = vmul.f32 %v117_v45, %v73_v44 }
 0x14f   :  { %78 = vperm.xlu0 %112, %v74_v46  }
 0x1ce   :  { %v79_v48 = vpop.permute.xlu0 %78 }
 0x1cf   :  { %v86_v49 = vrot.slane %v79_v48, %v44_v19 }
 0x1d1   :  { %v88_v51 = vmul.f32 %v86_v49, %v47_v24  ;;  %v89_v52 = vmul.f32 %v86_v49, %v48_v23 }
 0x1d3   :  { %v102_v53 = vadd.f32 %v100_v50, %v88_v51  ;;  %v103_v54 = vadd.f32 %v100_v50, %v89_v52 }
 0x1d5   :  { %104 = vst [vmem:[%s173_s3] sm:$0xff] %v102_v53  ;;  %105 = vst [vmem:[%s173_s3 + $0x8] sm:$0xff] %v103_v54 }

</bundles_post_ra>
